<compile_context>
chip_gen: v5e
topology: v5e:2x2
jax: 0.10.0
libtpu: 0.0.40
codegen_flags: <defaults>
</compile_context>

<pallas_src>
import functools
import itertools

import numpy as np

import jax
import jax.numpy as jnp
from jax.experimental import pallas as pl
from jax.experimental.pallas import tpu as pltpu

try:  # fast C Hungarian (same algorithm the PyTorch reference calls via scipy)
    from scipy.optimize import linear_sum_assignment as _scipy_lsa
except Exception:  # pragma: no cover
    _scipy_lsa = None


def _round_up(x, m):
    return ((x + m - 1) // m) * m


def _cdiv(a, b):
    return (a + b - 1) // b


# ----------------------------------------------------------------------------
# Pallas kernel: fused per-batch cost tile (class + L1 bbox + GIoU)
# ----------------------------------------------------------------------------
def _cost_matrix_kernel(logits_ref, qbox_ref, tbox_ref, onehot_ref, out_ref, *,
                        class_w, bbox_w, giou_w):
    # --- class cost: softmax gather recast as one-hot MXU matmul ----------------
    # Normalize AFTER the matmul: drops the (TM, C_pad) divide pass entirely.
    logits = logits_ref[...]                                     # (TM, C_pad)
    m = jnp.max(logits, axis=-1, keepdims=True)
    e = jnp.exp(logits - m)
    num = jnp.dot(e, onehot_ref[...],
                  preferred_element_type=jnp.float32)            # (TM, NT_pad)
    inv_den = pl.reciprocal(jnp.sum(e, axis=-1, keepdims=True),
                            approx=False)                        # (TM, 1)

    qb = qbox_ref[...]                                           # (TM, 4)
    tb = tbox_ref[...]                                           # (4, NT_pad)
    qcx, qcy, qw, qh = qb[:, 0:1], qb[:, 1:2], qb[:, 2:3], qb[:, 3:4]   # (TM, 1)
    tcx, tcy, tw, th = tb[0:1, :], tb[1:2, :], tb[2:3, :], tb[3:4, :]   # (1, NT_pad)

    # --- L1 bbox cost (torch.cdist p=1 in cxcywh space) -------------------------
    bbox_cost = (jnp.abs(qcx - tcx) + jnp.abs(qcy - tcy)
                 + jnp.abs(qw - tw) + jnp.abs(qh - th))          # (TM, NT_pad)

    # --- GIoU cost (center -> corners, pairwise) --------------------------------
    qx0, qy0 = qcx - 0.5 * qw, qcy - 0.5 * qh
    qx1, qy1 = qcx + 0.5 * qw, qcy + 0.5 * qh
    tx0, ty0 = tcx - 0.5 * tw, tcy - 0.5 * th
    tx1, ty1 = tcx + 0.5 * tw, tcy + 0.5 * th

    area_q = qw * qh                                             # (TM, 1)
    area_t = tw * th                                             # (1, NT_pad)

    inter = (jnp.maximum(jnp.minimum(qx1, tx1) - jnp.maximum(qx0, tx0), 0.0) *
             jnp.maximum(jnp.minimum(qy1, ty1) - jnp.maximum(qy0, ty0), 0.0))
    union = area_q + area_t - inter
    iou = inter / union

    # Enclosing-box extents are always >= 0 for valid (w,h >= 0) boxes: no clamp.
    encl = ((jnp.maximum(qx1, tx1) - jnp.minimum(qx0, tx0)) *
            (jnp.maximum(qy1, ty1) - jnp.minimum(qy0, ty0)))
    giou = iou - (encl - union) / encl

    # Weights and signs folded into the single final accumulation.
    out_ref[...] = (bbox_w * bbox_cost
                    + (-class_w) * (num * inv_den)
                    + (-giou_w) * giou).astype(out_ref.dtype)


def _choose_tile_m(num_queries, c_pad, nt_pad, batch):
    """Query-tile size from a VMEM budget; keep >=2 parallel grid steps if possible."""
    nq8 = _round_up(max(num_queries, 1), 8)
    # Budget for the two big double-buffered per-step tiles (logits + out); the
    # resident tbox/onehot blocks are small on top.  Well under the v5e 16 MiB
    # scoped default even before vmem_limit_bytes is raised, and safe on v7x.
    budget_bytes = 8 * 1024 * 1024
    bytes_per_row = 2 * 4 * (c_pad + nt_pad)          # double-buffered f32
    max_tm = max(8, (budget_bytes // bytes_per_row) // 8 * 8)
    n_tiles = _cdiv(nq8, min(nq8, max_tm))
    # v7x megacore: make sure the parallel grid has >= 2 total steps when possible.
    if batch * n_tiles < 2 and nq8 >= 16:
        n_tiles = 2
    tile_m = _round_up(_cdiv(nq8, n_tiles), 8)
    nq_pad = tile_m * _cdiv(nq8, tile_m)
    return tile_m, nq_pad


@functools.lru_cache(maxsize=None)
def _build_cost_matrix_call(batch, nq_pad, c_pad, nt_pad, tile_m,
                            class_w, bbox_w, giou_w):
    kernel = functools.partial(_cost_matrix_kernel,
                               class_w=class_w, bbox_w=bbox_w, giou_w=giou_w)
    n_qtiles = nq_pad // tile_m
    return pl.pallas_call(
        kernel,
        out_shape=jax.ShapeDtypeStruct((batch, nq_pad, nt_pad), jnp.float32),
        grid=(batch, n_qtiles),
        in_specs=[
            # Leading (batch) dim is squeezed out of every kernel Ref.
            pl.BlockSpec((None, tile_m, c_pad), lambda b, i: (b, i, 0)),   # logits
            pl.BlockSpec((None, tile_m, 4), lambda b, i: (b, i, 0)),       # query boxes
            pl.BlockSpec((None, 4, nt_pad), lambda b, i: (b, 0, 0)),       # target boxes (per batch)
            pl.BlockSpec((None, c_pad, nt_pad), lambda b, i: (b, 0, 0)),   # one-hot class map (per batch)
        ],
        out_specs=pl.BlockSpec((None, tile_m, nt_pad), lambda b, i: (b, i, 0)),
        compiler_params=pltpu.CompilerParams(
            dimension_semantics=("parallel", "parallel"),
            vmem_limit_bytes=32 * 1024 * 1024),
    )


def compute_blockdiag_cost(logits, pred_boxes, target_ids_list, target_boxes_list, *,
                           class_w, bbox_w, giou_w):
    """Per-batch block-diagonal DETR matching costs.

    Returns a device array of shape (B, NQ_pad, NT_pad); batch b's valid window
    is [:num_queries, :len(target_boxes_list[b])].
    """
    B, NQ, C = logits.shape
    sizes = [int(b.shape[0]) for b in target_boxes_list]
    max_s = max(sizes) if sizes else 0

    # Lane-dense padding: classes and (per-batch) targets to multiples of 128.
    C_pad = _round_up(C, 128)
    NT_pad = _round_up(max(max_s, 1), 128)
    tile_m, NQ_pad = _choose_tile_m(NQ, C_pad, NT_pad, B)

    # Single-pad constructions (one HBM pass each).
    logits_p = jnp.pad(logits.astype(jnp.float32),
                       ((0, 0), (0, NQ_pad - NQ), (0, C_pad - C)),
                       constant_values=-1e30)
    qbox = jnp.pad(pred_boxes.astype(jnp.float32),
                   ((0, 0), (0, NQ_pad - NQ), (0, 0)),
                   constant_values=0.5)                 # padded rows stay valid boxes

    # Target-side operands are tiny; build them on the host in one pass.
    ids_host = jax.device_get(list(target_ids_list))
    boxes_host = jax.device_get(list(target_boxes_list))
    tbox_np = np.full((B, 4, NT_pad), 0.5, np.float32)  # padded cols stay valid boxes
    onehot_np = np.zeros((B, C_pad, NT_pad), np.float32)
    for b, s in enumerate(sizes):
        if s:
            tbox_np[b, :, :s] = np.asarray(boxes_host[b], np.float32).T
            onehot_np[b, np.asarray(ids_host[b], np.int64), np.arange(s)] = 1.0
    tbox = jnp.asarray(tbox_np)
    onehot = jnp.asarray(onehot_np)

    call = _build_cost_matrix_call(B, NQ_pad, C_pad, NT_pad, tile_m,
                                   float(class_w), float(bbox_w), float(giou_w))
    return call(logits_p, qbox, tbox, onehot)


# ----------------------------------------------------------------------------
# Host-side Hungarian algorithm (== scipy.optimize.linear_sum_assignment)
# ----------------------------------------------------------------------------
def _linear_sum_assignment(cost):
    # TODO(synk): the Hungarian algorithm is inherently sequential; no clean Pallas
    # equivalent, so it runs on host (mirrors the reference's .cpu() + scipy path).
    cost = np.asarray(cost, dtype=np.float64)
    if _scipy_lsa is not None:
        row, col = _scipy_lsa(cost)
        return np.asarray(row, np.int64), np.asarray(col, np.int64)
    # Pure-Python fallback (O(n^3) Jonker-Volgenant style augmenting paths).
    n_rows, n_cols = cost.shape
    if n_rows == 0 or n_cols == 0:
        return np.empty(0, np.int64), np.empty(0, np.int64)
    transposed = n_rows > n_cols
    if transposed:
        cost = cost.T
    n, m = cost.shape                       # n <= m
    INF = 1e18
    u = [0.0] * (n + 1)
    v = [0.0] * (m + 1)
    p = [0] * (m + 1)
    way = [0] * (m + 1)
    for i in range(1, n + 1):
        p[0] = i
        j0 = 0
        minv = [INF] * (m + 1)
        used = [False] * (m + 1)
        while True:
            used[j0] = True
            i0 = p[j0]
            delta = INF
            j1 = 0
            for j in range(1, m + 1):
                if not used[j]:
                    cur = cost[i0 - 1, j - 1] - u[i0] - v[j]
                    if cur < minv[j]:
                        minv[j] = cur
                        way[j] = j0
                    if minv[j] < delta:
                        delta = minv[j]
                        j1 = j
            for j in range(m + 1):
                if used[j]:
                    u[p[j]] += delta
                    v[j] -= delta
                else:
                    minv[j] -= delta
            j0 = j1
            if p[j0] == 0:
                break
        while j0 != 0:
            j1 = way[j0]
            p[j0] = p[j1]
            j0 = j1
    rows, cols = [], []
    for j in range(1, m + 1):
        if p[j] != 0:
            rows.append(p[j] - 1)
            cols.append(j - 1)
    rows = np.asarray(rows, dtype=np.int64)
    cols = np.asarray(cols, dtype=np.int64)
    if transposed:
        rows, cols = cols, rows
    order = np.argsort(rows, kind="stable")
    return rows[order], cols[order]


# ----------------------------------------------------------------------------
# DetrHungarianMatcher
# ----------------------------------------------------------------------------
class DetrHungarianMatcher:
    def __init__(self, class_cost: float = 1.0, bbox_cost: float = 1.0,
                 giou_cost: float = 1.0, validate_boxes: bool = False):
        if class_cost == 0 and bbox_cost == 0 and giou_cost == 0:
            raise ValueError("All costs cannot be zero.")
        self.class_cost = float(class_cost)
        self.bbox_cost = float(bbox_cost)
        self.giou_cost = float(giou_cost)
        self.validate_boxes = bool(validate_boxes)

    def __call__(self, outputs, targets):
        return self.forward(outputs, targets)

    def forward(self, outputs, targets):
        logits = outputs["logits"]
        pred_boxes = outputs["pred_boxes"]
        ids_list = [t["class_labels"] for t in targets]
        boxes_list = [t["boxes"] for t in targets]
        sizes = [int(b.shape[0]) for b in boxes_list]
        num_queries = int(logits.shape[1])

        if self.validate_boxes:
            # generalized_box_iou format check (x1>=x0  <=>  w>=0).  Off by default:
            # it forces blocking device round-trips and breaks under jit.
            bad_pred = bool(jnp.any(pred_boxes[..., 2:] < 0))
            bad_tgt = any(bool(jnp.any(b[:, 2:] < 0)) for b in boxes_list if b.shape[0])
            if bad_pred or bad_tgt:
                raise ValueError("boxes must be in (cx, cy, w, h) format with w, h >= 0")

        if max(sizes, default=0) == 0:
            return [(np.empty(0, np.int64), np.empty(0, np.int64)) for _ in sizes]

        cost = compute_blockdiag_cost(
            logits, pred_boxes, ids_list, boxes_list,
            class_w=self.class_cost, bbox_w=self.bbox_cost, giou_w=self.giou_cost)

        # Transfer only each batch's valid (num_queries, size_b) slice to host.
        slices = [cost[b, :num_queries, :s] for b, s in enumerate(sizes)]
        host_slices = jax.device_get(slices)

        indices = []
        for b, s in enumerate(sizes):
            if s == 0:
                indices.append((np.empty(0, np.int64), np.empty(0, np.int64)))
                continue
            row, col = _linear_sum_assignment(np.asarray(host_slices[b], np.float64))
            indices.append((np.asarray(row, np.int64), np.asarray(col, np.int64)))
        return indices


# ----------------------------------------------------------------------------
# Pure-JAX reference (for validation of the Pallas cost matrix)
# ----------------------------------------------------------------------------
def _center_to_corners(b):
    cx, cy, w, h = b[:, 0], b[:, 1], b[:, 2], b[:, 3]
    return jnp.stack([cx - 0.5 * w, cy - 0.5 * h, cx + 0.5 * w, cy + 0.5 * h], axis=-1)


def _generalized_box_iou(b1, b2):
    area1 = (b1[:, 2] - b1[:, 0]) * (b1[:, 3] - b1[:, 1])
    area2 = (b2[:, 2] - b2[:, 0]) * (b2[:, 3] - b2[:, 1])
    lt = jnp.maximum(b1[:, None, :2], b2[None, :, :2])
    rb = jnp.minimum(b1[:, None, 2:], b2[None, :, 2:])
    wh = jnp.maximum(rb - lt, 0.0)
    inter = wh[:, :, 0] * wh[:, :, 1]
    union = area1[:, None] + area2[None, :] - inter
    iou = inter / union
    lt2 = jnp.minimum(b1[:, None, :2], b2[None, :, :2])
    rb2 = jnp.maximum(b1[:, None, 2:], b2[None, :, 2:])
    wh2 = jnp.maximum(rb2 - lt2, 0.0)
    area = wh2[:, :, 0] * wh2[:, :, 1]
    return iou - (area - union) / area


def _reference_cost_matrix(logits, pred_boxes, target_ids, target_boxes,
                           class_w, bbox_w, giou_w):
    B, NQ, C = logits.shape
    out_prob = jax.nn.softmax(logits.reshape(-1, C).astype(jnp.float32), axis=-1)
    out_bbox = pred_boxes.reshape(-1, 4).astype(jnp.float32)
    class_cost = -out_prob[:, target_ids]
    bbox_cost = jnp.sum(jnp.abs(out_bbox[:, None, :] - target_boxes[None, :, :]), axis=-1)
    giou_cost = -_generalized_box_iou(_center_to_corners(out_bbox),
                                      _center_to_corners(target_boxes))
    cm = bbox_w * bbox_cost + class_w * class_cost + giou_w * giou_cost
    return cm.reshape(B, NQ, -1)


def _brute_force_min_cost(c):
    nq, nt = c.shape
    best = np.inf
    for perm in itertools.permutations(range(nq), nt):
        best = min(best, sum(c[perm[j], j] for j in range(nt)))
    return best


if __name__ == "__main__":
    key = jax.random.PRNGKey(0)
    B, NQ, NUM_CLASSES = 2, 8, 5          # 4 object classes + "no object"
    kl, kb, kt = jax.random.split(key, 3)

    logits = jax.random.normal(kl, (B, NQ, NUM_CLASSES), jnp.float32)
    pred_boxes = jax.nn.sigmoid(jax.random.normal(kb, (B, NQ, 4), jnp.float32))

    sizes = (3, 2)
    targets = []
    tkeys = jax.random.split(kt, 3 * len(sizes))
    for i, s in enumerate(sizes):
        klab, kcen, kwh = tkeys[3 * i:3 * i + 3]
        labels = jax.random.randint(klab, (s,), 0, NUM_CLASSES - 1)
        centers = jax.random.uniform(kcen, (s, 2), minval=0.3, maxval=0.7)
        wh = jax.random.uniform(kwh, (s, 2), minval=0.1, maxval=0.4)
        targets.append({"class_labels": labels,
                        "boxes": jnp.concatenate([centers, wh], axis=-1)})

    class_w, bbox_w, giou_w = 1.0, 5.0, 2.0
    matcher = DetrHungarianMatcher(class_cost=class_w, bbox_cost=bbox_w, giou_cost=giou_w)
    outputs = {"logits": logits, "pred_boxes": pred_boxes}

    # --- run the Pallas per-batch cost kernel once and validate ----------------
    ids_list = [t["class_labels"] for t in targets]
    boxes_list = [t["boxes"] for t in targets]
    cost = compute_blockdiag_cost(logits, pred_boxes, ids_list, boxes_list,
                                  class_w=class_w, bbox_w=bbox_w, giou_w=giou_w)
    cost = jax.block_until_ready(cost)
    cost_np = np.asarray(cost)

    target_ids = jnp.concatenate(ids_list)
    target_boxes = jnp.concatenate(boxes_list)
    ref_np = np.asarray(_reference_cost_matrix(logits, pred_boxes, target_ids,
                                               target_boxes, class_w, bbox_w, giou_w))
    start = 0
    for b, s in enumerate(sizes):
        np.testing.assert_allclose(cost_np[b, :NQ, :s],
                                   ref_np[b, :, start:start + s],
                                   rtol=1e-4, atol=1e-4)
        start += s

    # --- full matcher forward + brute-force optimality check -------------------
    indices = matcher(outputs, targets)
    for b, s in enumerate(sizes):
        c = cost_np[b, :NQ, :s]
        row, col = indices[b]
        assert row.dtype == np.int64 and col.dtype == np.int64
        assert len(row) == s and len(col) == s
        assert abs(float(c[row, col].sum()) - _brute_force_min_cost(c)) < 1e-5

    print("KERNEL_OK")
</pallas_src>

<mosaic_0001>
module attributes {stable_mosaic.version = 11 : i64} {
  func.func @_cost_matrix_kernel(%arg0: i32, %arg1: i32, %arg2: memref<1x8x128xf32, #tpu.memory_space<vmem>>, %arg3: memref<1x8x4xf32, #tpu.memory_space<vmem>>, %arg4: memref<1x4x128xf32, #tpu.memory_space<vmem>>, %arg5: memref<1x128x128xf32, #tpu.memory_space<vmem>>, %arg6: memref<1x8x128xf32, #tpu.memory_space<vmem>>) attributes {dimension_semantics = [#tpu.dimension_semantics<parallel>, #tpu.dimension_semantics<parallel>], iteration_bounds = array<i64: 2, 1>, scalar_prefetch = 0 : i64, scratch_operands = 0 : i64, tpu.core_type = #tpu.core_type<tc>, window_params = [{transform_indices = @transform_0, window_bounds = array<i64: 1, 8, 128>}, {transform_indices = @transform_1, window_bounds = array<i64: 1, 8, 4>}, {transform_indices = @transform_2, window_bounds = array<i64: 1, 4, 128>}, {transform_indices = @transform_3, window_bounds = array<i64: 1, 128, 128>}, {transform_indices = @transform_4, window_bounds = array<i64: 1, 8, 128>}]} {
    %c0 = arith.constant 0 : index
    %c0_0 = arith.constant 0 : index
    %c0_1 = arith.constant 0 : index
    %0 = vector.load %arg2[%c0, %c0_0, %c0_1] : memref<1x8x128xf32, #tpu.memory_space<vmem>>, vector<1x8x128xf32>
    %1 = vector.shape_cast %0 : vector<1x8x128xf32> to vector<8x128xf32>
    %cst = arith.constant dense<0xFF800000> : vector<8xf32>
    %2 = vector.multi_reduction <maximumf>, %1, %cst [1] : vector<8x128xf32> to vector<8xf32>
    %3 = vector.shape_cast %2 : vector<8xf32> to vector<8x1xf32>
    %4 = vector.broadcast %3 : vector<8x1xf32> to vector<8x128xf32>
    %5 = arith.subf %1, %4 : vector<8x128xf32>
    %6 = math.exp %5 : vector<8x128xf32>
    %c0_2 = arith.constant 0 : index
    %c0_3 = arith.constant 0 : index
    %c0_4 = arith.constant 0 : index
    %7 = vector.load %arg5[%c0_2, %c0_3, %c0_4] : memref<1x128x128xf32, #tpu.memory_space<vmem>>, vector<1x128x128xf32>
    %8 = vector.shape_cast %7 : vector<1x128x128xf32> to vector<128x128xf32>
    %cst_5 = arith.constant dense<0.000000e+00> : vector<8x128xf32>
    %9 = tpu.matmul %6, %8, %cst_5 {dimension_numbers = #tpu.dot_dimension_numbers<[1], [0], [0], [1], [0, 0, 1, 1], [], []>} : vector<8x128xf32>, vector<128x128xf32>, vector<8x128xf32> -> vector<8x128xf32>
    %cst_6 = arith.constant dense<0.000000e+00> : vector<8xf32>
    %10 = vector.multi_reduction <add>, %6, %cst_6 [1] : vector<8x128xf32> to vector<8xf32>
    %11 = vector.shape_cast %10 : vector<8xf32> to vector<8x1xf32>
    %12 = tpu.reciprocal %11 : vector<8x1xf32> -> vector<8x1xf32>
    %c0_7 = arith.constant 0 : index
    %c0_8 = arith.constant 0 : index
    %c0_9 = arith.constant 0 : index
    %13 = vector.load %arg3[%c0_7, %c0_8, %c0_9] : memref<1x8x4xf32, #tpu.memory_space<vmem>>, vector<1x8x4xf32>
    %14 = vector.shape_cast %13 : vector<1x8x4xf32> to vector<8x4xf32>
    %c0_10 = arith.constant 0 : index
    %c0_11 = arith.constant 0 : index
    %c0_12 = arith.constant 0 : index
    %15 = vector.load %arg4[%c0_10, %c0_11, %c0_12] : memref<1x4x128xf32, #tpu.memory_space<vmem>>, vector<1x4x128xf32>
    %16 = vector.shape_cast %15 : vector<1x4x128xf32> to vector<4x128xf32>
    %17 = vector.extract_strided_slice %14 {offsets = [0, 0], sizes = [8, 1], strides = [1, 1]} : vector<8x4xf32> to vector<8x1xf32>
    %18 = vector.extract_strided_slice %14 {offsets = [0, 1], sizes = [8, 1], strides = [1, 1]} : vector<8x4xf32> to vector<8x1xf32>
    %19 = vector.extract_strided_slice %14 {offsets = [0, 2], sizes = [8, 1], strides = [1, 1]} : vector<8x4xf32> to vector<8x1xf32>
    %20 = vector.extract_strided_slice %14 {offsets = [0, 3], sizes = [8, 1], strides = [1, 1]} : vector<8x4xf32> to vector<8x1xf32>
    %21 = vector.extract_strided_slice %16 {offsets = [0, 0], sizes = [1, 128], strides = [1, 1]} : vector<4x128xf32> to vector<1x128xf32>
    %22 = vector.extract_strided_slice %16 {offsets = [1, 0], sizes = [1, 128], strides = [1, 1]} : vector<4x128xf32> to vector<1x128xf32>
    %23 = vector.extract_strided_slice %16 {offsets = [2, 0], sizes = [1, 128], strides = [1, 1]} : vector<4x128xf32> to vector<1x128xf32>
    %24 = vector.extract_strided_slice %16 {offsets = [3, 0], sizes = [1, 128], strides = [1, 1]} : vector<4x128xf32> to vector<1x128xf32>
    %25 = vector.broadcast %17 : vector<8x1xf32> to vector<8x128xf32>
    %26 = vector.broadcast %21 : vector<1x128xf32> to vector<8x128xf32>
    %27 = arith.subf %25, %26 : vector<8x128xf32>
    %28 = math.absf %27 : vector<8x128xf32>
    %29 = vector.broadcast %18 : vector<8x1xf32> to vector<8x128xf32>
    %30 = vector.broadcast %22 : vector<1x128xf32> to vector<8x128xf32>
    %31 = arith.subf %29, %30 : vector<8x128xf32>
    %32 = math.absf %31 : vector<8x128xf32>
    %33 = arith.addf %28, %32 : vector<8x128xf32>
    %34 = vector.broadcast %19 : vector<8x1xf32> to vector<8x128xf32>
    %35 = vector.broadcast %23 : vector<1x128xf32> to vector<8x128xf32>
    %36 = arith.subf %34, %35 : vector<8x128xf32>
    %37 = math.absf %36 : vector<8x128xf32>
    %38 = arith.addf %33, %37 : vector<8x128xf32>
    %39 = vector.broadcast %20 : vector<8x1xf32> to vector<8x128xf32>
    %40 = vector.broadcast %24 : vector<1x128xf32> to vector<8x128xf32>
    %41 = arith.subf %39, %40 : vector<8x128xf32>
    %42 = math.absf %41 : vector<8x128xf32>
    %43 = arith.addf %38, %42 : vector<8x128xf32>
    %cst_13 = arith.constant 5.000000e-01 : f32
    %44 = vector.broadcast %cst_13 : f32 to vector<8x1xf32>
    %45 = arith.mulf %44, %19 : vector<8x1xf32>
    %46 = arith.subf %17, %45 : vector<8x1xf32>
    %cst_14 = arith.constant 5.000000e-01 : f32
    %47 = vector.broadcast %cst_14 : f32 to vector<8x1xf32>
    %48 = arith.mulf %47, %20 : vector<8x1xf32>
    %49 = arith.subf %18, %48 : vector<8x1xf32>
    %cst_15 = arith.constant 5.000000e-01 : f32
    %50 = vector.broadcast %cst_15 : f32 to vector<8x1xf32>
    %51 = arith.mulf %50, %19 : vector<8x1xf32>
    %52 = arith.addf %17, %51 : vector<8x1xf32>
    %cst_16 = arith.constant 5.000000e-01 : f32
    %53 = vector.broadcast %cst_16 : f32 to vector<8x1xf32>
    %54 = arith.mulf %53, %20 : vector<8x1xf32>
    %55 = arith.addf %18, %54 : vector<8x1xf32>
    %cst_17 = arith.constant 5.000000e-01 : f32
    %56 = vector.broadcast %cst_17 : f32 to vector<1x128xf32>
    %57 = arith.mulf %56, %23 : vector<1x128xf32>
    %58 = arith.subf %21, %57 : vector<1x128xf32>
    %cst_18 = arith.constant 5.000000e-01 : f32
    %59 = vector.broadcast %cst_18 : f32 to vector<1x128xf32>
    %60 = arith.mulf %59, %24 : vector<1x128xf32>
    %61 = arith.subf %22, %60 : vector<1x128xf32>
    %cst_19 = arith.constant 5.000000e-01 : f32
    %62 = vector.broadcast %cst_19 : f32 to vector<1x128xf32>
    %63 = arith.mulf %62, %23 : vector<1x128xf32>
    %64 = arith.addf %21, %63 : vector<1x128xf32>
    %cst_20 = arith.constant 5.000000e-01 : f32
    %65 = vector.broadcast %cst_20 : f32 to vector<1x128xf32>
    %66 = arith.mulf %65, %24 : vector<1x128xf32>
    %67 = arith.addf %22, %66 : vector<1x128xf32>
    %68 = arith.mulf %19, %20 : vector<8x1xf32>
    %69 = arith.mulf %23, %24 : vector<1x128xf32>
    %70 = vector.broadcast %52 : vector<8x1xf32> to vector<8x128xf32>
    %71 = vector.broadcast %64 : vector<1x128xf32> to vector<8x128xf32>
    %72 = arith.minimumf %70, %71 : vector<8x128xf32>
    %73 = vector.broadcast %46 : vector<8x1xf32> to vector<8x128xf32>
    %74 = vector.broadcast %58 : vector<1x128xf32> to vector<8x128xf32>
    %75 = arith.maximumf %73, %74 : vector<8x128xf32>
    %76 = arith.subf %72, %75 : vector<8x128xf32>
    %cst_21 = arith.constant 0.000000e+00 : f32
    %77 = vector.broadcast %cst_21 : f32 to vector<8x128xf32>
    %78 = arith.maximumf %76, %77 : vector<8x128xf32>
    %79 = vector.broadcast %55 : vector<8x1xf32> to vector<8x128xf32>
    %80 = vector.broadcast %67 : vector<1x128xf32> to vector<8x128xf32>
    %81 = arith.minimumf %79, %80 : vector<8x128xf32>
    %82 = vector.broadcast %49 : vector<8x1xf32> to vector<8x128xf32>
    %83 = vector.broadcast %61 : vector<1x128xf32> to vector<8x128xf32>
    %84 = arith.maximumf %82, %83 : vector<8x128xf32>
    %85 = arith.subf %81, %84 : vector<8x128xf32>
    %cst_22 = arith.constant 0.000000e+00 : f32
    %86 = vector.broadcast %cst_22 : f32 to vector<8x128xf32>
    %87 = arith.maximumf %85, %86 : vector<8x128xf32>
    %88 = arith.mulf %78, %87 : vector<8x128xf32>
    %89 = vector.broadcast %68 : vector<8x1xf32> to vector<8x128xf32>
    %90 = vector.broadcast %69 : vector<1x128xf32> to vector<8x128xf32>
    %91 = arith.addf %89, %90 : vector<8x128xf32>
    %92 = arith.subf %91, %88 : vector<8x128xf32>
    %93 = arith.divf %88, %92 : vector<8x128xf32>
    %94 = vector.broadcast %52 : vector<8x1xf32> to vector<8x128xf32>
    %95 = vector.broadcast %64 : vector<1x128xf32> to vector<8x128xf32>
    %96 = arith.maximumf %94, %95 : vector<8x128xf32>
    %97 = vector.broadcast %46 : vector<8x1xf32> to vector<8x128xf32>
    %98 = vector.broadcast %58 : vector<1x128xf32> to vector<8x128xf32>
    %99 = arith.minimumf %97, %98 : vector<8x128xf32>
    %100 = arith.subf %96, %99 : vector<8x128xf32>
    %101 = vector.broadcast %55 : vector<8x1xf32> to vector<8x128xf32>
    %102 = vector.broadcast %67 : vector<1x128xf32> to vector<8x128xf32>
    %103 = arith.maximumf %101, %102 : vector<8x128xf32>
    %104 = vector.broadcast %49 : vector<8x1xf32> to vector<8x128xf32>
    %105 = vector.broadcast %61 : vector<1x128xf32> to vector<8x128xf32>
    %106 = arith.minimumf %104, %105 : vector<8x128xf32>
    %107 = arith.subf %103, %106 : vector<8x128xf32>
    %108 = arith.mulf %100, %107 : vector<8x128xf32>
    %109 = arith.subf %108, %92 : vector<8x128xf32>
    %110 = arith.divf %109, %108 : vector<8x128xf32>
    %111 = arith.subf %93, %110 : vector<8x128xf32>
    %cst_23 = arith.constant 5.000000e+00 : f32
    %112 = vector.broadcast %cst_23 : f32 to vector<8x128xf32>
    %113 = arith.mulf %112, %43 : vector<8x128xf32>
    %114 = vector.broadcast %12 : vector<8x1xf32> to vector<8x128xf32>
    %115 = arith.mulf %9, %114 : vector<8x128xf32>
    %cst_24 = arith.constant -1.000000e+00 : f32
    %116 = vector.broadcast %cst_24 : f32 to vector<8x128xf32>
    %117 = arith.mulf %116, %115 : vector<8x128xf32>
    %118 = arith.addf %113, %117 : vector<8x128xf32>
    %cst_25 = arith.constant -2.000000e+00 : f32
    %119 = vector.broadcast %cst_25 : f32 to vector<8x128xf32>
    %120 = arith.mulf %119, %111 : vector<8x128xf32>
    %121 = arith.addf %118, %120 : vector<8x128xf32>
    %c0_26 = arith.constant 0 : index
    %c0_27 = arith.constant 0 : index
    %c0_28 = arith.constant 0 : index
    %122 = vector.load %arg6[%c0_26, %c0_27, %c0_28] : memref<1x8x128xf32, #tpu.memory_space<vmem>>, vector<1x8x128xf32>
    %123 = vector.shape_cast %122 : vector<1x8x128xf32> to vector<8x128xf32>
    %124 = vector.shape_cast %121 : vector<8x128xf32> to vector<1x8x128xf32>
    tpu.vector_store %arg6[%c0_26, %c0_27, %c0_28], %124 {strides = array<i32>} : memref<1x8x128xf32, #tpu.memory_space<vmem>>, vector<1x8x128xf32>,
    return
  }
  func.func @transform_0(%arg0: i32, %arg1: i32) -> (i32, i32, i32) {
    %c0_i32 = arith.constant 0 : i32
    %c0_i32_0 = arith.constant 0 : i32
    return %arg0, %arg1, %c0_i32 : i32, i32, i32
  }
  func.func @transform_1(%arg0: i32, %arg1: i32) -> (i32, i32, i32) {
    %c0_i32 = arith.constant 0 : i32
    %c0_i32_0 = arith.constant 0 : i32
    return %arg0, %arg1, %c0_i32 : i32, i32, i32
  }
  func.func @transform_2(%arg0: i32, %arg1: i32) -> (i32, i32, i32) {
    %c0_i32 = arith.constant 0 : i32
    %c0_i32_0 = arith.constant 0 : i32
    %c0_i32_1 = arith.constant 0 : i32
    return %arg0, %c0_i32, %c0_i32_0 : i32, i32, i32
  }
  func.func @transform_3(%arg0: i32, %arg1: i32) -> (i32, i32, i32) {
    %c0_i32 = arith.constant 0 : i32
    %c0_i32_0 = arith.constant 0 : i32
    %c0_i32_1 = arith.constant 0 : i32
    return %arg0, %c0_i32, %c0_i32_0 : i32, i32, i32
  }
  func.func @transform_4(%arg0: i32, %arg1: i32) -> (i32, i32, i32) {
    %c0_i32 = arith.constant 0 : i32
    %c0_i32_0 = arith.constant 0 : i32
    return %arg0, %arg1, %c0_i32 : i32, i32, i32
  }
}

</mosaic_0001>

<bundles_post_ra>
// kernel: tpu_custom_call.1
= control target key start
LH: loop header
LB: loop body
LE: loop exit
PB: predicated region body
PF: predicated region fallthrough
CT: control target
= control target key end

     0   :  { %9 = vsyncpa [#allocation3], 0  ;;  %s1090_s0 = inlined_call_operand.vmem [shape: f32[2,8,128], index: 0, kind: input, shape index: {}]   ;;  %s1091_s1 = inlined_call_operand.vmem [shape: f32[2,8,4], index: 1, kind: input, shape index: {}]   ;;  %s1092_s2 = inlined_call_operand.vmem [shape: f32[2,4,128], index: 2, kind: input, shape index: {}]   ;;  %s1093_s3 = inlined_call_operand.hbm [shape: f32[2,128,128], index: 3, kind: input, shape index: {}]   ;;  %s1094_s4 = inlined_call_operand.hbm [shape: f32[2,8,128], index: 4, kind: output, shape index: {}]  }
   0x1   :  { %11 = vsyncpa [#allocation3 + $0x1], 0 }
   0x2   :  { %12 = vsyncpa [#allocation4], 0 }
   0x3   :  { %14 = vsyncpa [#allocation4 + $0x1], 0  ;;  %s894_s15 = smov 0   ;;  %s896_s16 = smov 0  }
   0x4   :  { %s898_s17 = smov 0   ;;  %s900_s18 = smov 0  }
   0x5   :  { %s902_s19 = smov 0   ;;  %s904_s20 = smov 0  }
   0x6 LB: > { %s641_s21 = sadd.s32 4294967295, %s859_s20   ;;  %s642_s22 = sadd.s32 4294967294, %s859_s20   ;;  %s859_s20 = sphi %s904_s20, %s20_s20   ;;  %s855_s19 = sphi %s902_s19, %s1103_s19   ;;  %s851_s18 = sphi %s900_s18, %s1102_s18   ;;  %s847_s17 = sphi %s898_s17, %s1101_s17   ;;  %s843_s16 = sphi %s896_s16, %s1100_s16   ;;  %s839_s15 = sphi %s894_s15, %s1099_s15  }
   0x7   : > { %s32_s23 = sadd.s32 1, %s855_s19  ;;  %s121_s24 = sadd.s32 1, %s847_s17 }
   0x8   : > { %p34_p0 = scmp.ge.s32.totalorder %s32_s23, 2  ;;  %p128_p1 = scmp.ne.s32.totalorder %s847_s17, %s843_s16 }
   0x9   : > { %p129_p2 = scmp.eq.s32.totalorder %s859_s20, 0  ;;  %p134_p3 = scmp.ne.s32.totalorder %s843_s16, %s839_s15 }
   0xa   : > { %s1105_s23 = smov (%p34_p0, %s32_s23), 0  ;;  %p135_p5 = scmp.eq.s32.totalorder %s641_s21, 0 }
   0xb   : > { %p935_p4 = por %p129_p2, %p128_p1  ;;  %s118_s26 = ssub.s32 %s855_s19, %s1105_s23 }
   0xc   : > { %p160_p6 = scmp.eq.s32.totalorder %s641_s21, 1  ;;  %p119_p7 = scmp.eq.s32.totalorder %s118_s26, 0 }
   0xd   : > { %p941_p8 = por %p135_p5, %p134_p3  ;;  %p166_p10 = scmp.eq.s32.totalorder %s642_s22, 1 }
   0xe   : > { %p945_p9 = por %p160_p6, %p128_p1  ;;  %p644_p12 = scmp.ge.s32.totalorder %s859_s20, 2 }
   0xf   : > { %s950_s29 = scalar_select %p119_p7, %s847_s17, %s121_s24  }
  0x10   : > { %p952_p11 = por %p166_p10, %p134_p3  ;;  %p671_p13 = scmp.lt.s32.totalorder %s859_s20, 2 }
  0x11   : > { %s213_s5 = sand.u32 1, %s847_s17   ;;  %s658_s7 = sshll.u32 %s855_s19, 7 }
  0x12   : > { %s645_s6 = sshll.u32 %s213_s5, 7  ;;  %s222_s10 = scalar_lea.hbm %s1093_s3, %s658_s7 }
  0x13   : > { %s217_s11 = scalar_lea.vmem [#allocation2], %s645_s6  ;;  %s223_s13 = sshll.u32 %s222_s10, 4  ;;  %s224_s13 = int_to_ptr.hbm [resolvable:$true] %s223_s13 }
  0x14   : > { %s225_s12 = sshll.u32 %s217_s11, 4  ;;  %p664_p0 = pnand %p671_p13, %p935_p4  ;;  %s226_s12 = int_to_ptr.vmem [resolvable:$true] %s225_s12 }
  0x15   : > { %p648_p1 = scmp.ge.s32.totalorder %s859_s20, 1  ;;  %s214_s14 = scalar_lea.sflag [#allocation3], %s213_s5 }
  0x16   : > { %s861_s21 = smov 128   ;;  %s862_s22 = smov 8  }
  0x17   : > { %666 = dma.hbm_to_vmem [thread:$0]  (!%p664_p0), %s224_s13, 2048, %s226_s12, %s214_s14, %s861_s21, %s861_s21, %s862_s22  }
  0x18   : > { %p233_p2 = scmp.lt.s32.totalorder %s859_s20, 3 }
  0x1a   : > { %p234_p3 = pnand %p648_p1, %p233_p2 }
  0x1b   : > { %s968_s24 = sand.u32 (!%p234_p3), 1, %s843_s16  }
  0x1c   : > { %237 = sbr.rel (%p234_p3) target bundleno = 373 (0x175), region = 36  ;;  %s649_s26 = sshll.u32 (!%p234_p3), %s968_s24, 7 }
  0x1d   : > { %s240_s6 = scalar_lea.sflag (!%p234_p3), [#allocation3], %s968_s24  ;;  %s972_s7 = scalar_lea.vmem (!%p234_p3), [#allocation2], %s649_s26 }
  0x21   : > { %830 = dma.done.wait (%p941_p8), %s240_s6, 2048  }
  0x22   : > { %832 = vsyncadd (%p941_p8), %s240_s6, 4294965248  ;;  %p287_p4 = scmp.lt.s32.totalorder %s851_s18, 1  ;;  %s863_s13 = smov 127   ;;  %v326_v2 = vld [vmem:[%s972_s7 + $0x78] sm:$0xff]  ;;  %v325_v3 = vld [vmem:[%s972_s7 + $0x70] sm:$0xff]  ;;  %v865_v18 = vmov 2  }
  0x23   : > { %327 = vmatpush.msra.mxu0 %v326_v2  ;;  %v324_v4 = vld [vmem:[%s972_s7 + $0x68] sm:$0xff]  ;;  %v323_v5 = vld [vmem:[%s972_s7 + $0x60] sm:$0xff]  ;;  %v322_v6 = vld [vmem:[%s972_s7 + $0x58] sm:$0xff]  ;;  %s864_s14 = smov 126   ;;  %729 = vset.pattern.permute.xlu2 %v865_v18  ;;  %v866_v20 = vmov 0   ;;  %v867_v21 = vmov 1  }
  0x24   : > { %s980_s25 = scalar_select %p287_p4, %s851_s18, 1  ;;  %v321_v7 = vld [vmem:[%s972_s7 + $0x50] sm:$0xff]  ;;  %v320_v8 = vld [vmem:[%s972_s7 + $0x48] sm:$0xff]  ;;  %v319_v9 = vld [vmem:[%s972_s7 + $0x40] sm:$0xff]  ;;  %730 = vset.pattern.permute.xlu1 %v866_v20  ;;  %735 = vset.pattern.permute.xlu0 %v867_v21  ;;  %v868_v31 = vmov 3  }
  0x25   : > { %328 = vmatpush.msra.mxu0 %v325_v3  ;;  %v318_v10 = vld [vmem:[%s972_s7 + $0x38] sm:$0xff]  ;;  %v317_v12 = vld [vmem:[%s972_s7 + $0x30] sm:$0xff]  ;;  %v316_v13 = vld [vmem:[%s972_s7 + $0x28] sm:$0xff]  ;;  %s797_s22 = scalar_lea.hbm %s1094_s4, 16 }
  0x26   : > { %s651_s5 = sshll.u32 %s980_s25, 3  ;;  %v315_v14 = vld [vmem:[%s972_s7 + $0x20] sm:$0xff]  ;;  %v314_v15 = vld [vmem:[%s972_s7 + $0x18] sm:$0xff]  ;;  %v313_v16 = vld [vmem:[%s972_s7 + $0x10] sm:$0xff]  ;;  %s653_s21 = sshll.u32 %s980_s25, 2 }
  0x27   : > { %s293_s10 = scalar_lea.vmem %s1090_s0, %s651_s5  ;;  %s300_s27 = scalar_lea.vmem %s1091_s1, %s651_s5  ;;  %329 = vmatpush.msra.mxu0 %v324_v4  ;;  %v312_v17 = vld [vmem:[%s972_s7 + $0x8] sm:$0xff]  ;;  %v311_v19 = vld [vmem:[%s972_s7] sm:$0xff] }
  0x28   : > { %v305_v0 = vld [vmem:[%s293_s10] sm:$0xff]  ;;  %s304_s6 = scalar_lea.vmem %s1092_s2, %s653_s21  ;;  %s650_s7 = sshll.u32 %s968_s24, 3 }
  0x29   : > { %v989_v1 = vld [vmem:[%s300_s27] sm:$0xff]  ;;  %306 = vmax.xlane.f32.xlu0 %v305_v0  ;;  %330 = vmatpush.msra.mxu0 %v323_v5  ;;  %s655_s25 = sshll.u32 %s851_s18, 3  ;;  %s286_s10 = scalar_lea.vmem [#allocation5], %s650_s7 }
  0x2a   : > { %410 = vrot.lane.b32.xlu1 %v989_v1, %s863_s13  ;;  %v397_v11 = vmul.f32 0.5, %v989_v1  ;;  %v1020_v33 = vld [vmem:[%s304_s6] sm:$0xf]  ;;  %s515_s9 = scalar_lea.hbm %s1094_s4, %s655_s25  ;;  %s517_s11 = sshll.u32 %s286_s10, 4  ;;  %s518_s11 = int_to_ptr.vmem [resolvable:$true] %s517_s11 }
  0x2b   : > { %331 = vmatpush.msra.mxu0 %v322_v6  ;;  %v404_v34 = vmul.f32 0.5, %v1020_v33  ;;  %v415_v45 = vrot.slane %v1020_v33, 1  ;;  %s519_s12 = sshll.u32 %s515_s9, 4  ;;  %s504_s18 = scalar_lea.sflag [#allocation4], %s968_s24  ;;  %s520_s12 = int_to_ptr.hbm [resolvable:$true] %s519_s12 }
  0x2c   : > { %s791_s27 = sshra.s32 %s520_s12, 4  ;;  %s792_s27 = int_to_ptr.hbm [resolvable:$true] %s791_s27 }
  0x2d   : > { %332 = vmatpush.msra.mxu0 %v321_v7  ;;  %v406_v37 = vrot.slane %v404_v34, 2  ;;  %v417_v50 = vmul.f32 %v415_v45, %v1020_v33  ;;  %v370_v7 = vperm.slane %v1020_v33, 0  ;;  %s793_s13 = scalar_lea.hbm %s792_s27, 8  ;;  %p798_p8 = scmp.lt.s32.totalorder %s792_s27, %s1094_s4 }
  0x2e   : > { %p794_p5 = scmp.ne.s32.totalorder %s792_s27, %s793_s13  ;;  %p799_p10 = scmp.lt.s32.totalorder %s797_s22, %s793_s13 }
  0x2f   : > { %333 = vmatpush.msra.mxu0 %v320_v8  ;;  %v408_v38 = vsub.f32 %v1020_v33, %v406_v37  ;;  %v409_v39 = vadd.f32 %v406_v37, %v1020_v33  ;;  %v454_v54 = vperm.slane %v417_v50, 2  ;;  %v377_v8 = vperm.slane %v1020_v33, 1 }
  0x30   : > { %p795_p6 = pnand %p794_p5, %p945_p9  ;;  %p800_p13 = por %p799_p10, %p798_p8 }
  0x31   : > { %334 = vmatpush.msra.mxu0 %v319_v9  ;;  %v444_v40 = vperm.slane %v408_v38, 1  ;;  %v438_v42 = vperm.slane %v409_v39, 1  ;;  %v423_v43 = vperm.slane %v409_v39, 0  ;;  %v430_v46 = vperm.slane %v408_v38, 0 }
  0x32   : > { %p796_p7 = pneg %p795_p6 }
  0x33   : > { %335 = vmatpush.msra.mxu0 %v318_v10 }
  0x34   : > { %p801_p0 = pnand %p800_p13, %p796_p7 }
  0x35   : > { %336 = vmatpush.msra.mxu0 %v317_v12 }
  0x37   : > { %337 = vmatpush.msra.mxu0 %v316_v13 }
  0x39   : > { %338 = vmatpush.msra.mxu0 %v315_v14  ;;  %v385_v14 = vperm.slane %v1020_v33, 2 }
  0x3b   : > { %339 = vmatpush.msra.mxu0 %v314_v15 }
  0x3d   : > { %399 = vrot.lane.b32.xlu0 %v397_v11, %s864_s14  ;;  %340 = vmatpush.msra.mxu0 %v313_v16 }
  0x3f   : > { %341 = vmatpush.msra.mxu0 %v312_v17 }
  0x41   : > { %342 = vmatpush.msra.mxu0 %v311_v19 }
  0x45   : > { %374 = vperm.xlu0 %735, %v989_v1  }
  0x4d   : > { %738 = vset.pattern.permute.xlu0 %v865_v18 }
  0x9c   : > { %v411_v22 = vpop.permute.xlu1 %410  ;;  %v307_v23 = vpop.xlane.xlu0 %306 }
  0x9d   : > { %v413_v24 = vmul.f32 %v411_v22, %v989_v1  ;;  %v308_v25 = vsub.f32 %v305_v0, %v307_v23 }
  0x9f   : > { %451 = vperm.xlu2 %729, %v413_v24   ;;  %v309_v26 = vmul.f32 1.442695, %v308_v25  ;;  %v393_v24 = vperm.slane %v1020_v33, 3 }
  0xa1   : > { %739 = vpow2.f32 %v309_v26 }
  0xa7   : > { %731 = vset.pattern.permute.xlu2 %v866_v20  ;;  %v740_v27 = vpop.eup %739 }
  0xa8   : > { %343 = vmatmul.f32.vlgmr.msra.gmra.mxu0 %v740_v27 }
  0xaf   : > { %v400_v28 = vpop.permute.xlu0 %399 }
  0xb0   : > { %v402_v29 = vsub.f32 %v989_v1, %v400_v28  ;;  %v403_v30 = vadd.f32 %v400_v28, %v989_v1 }
  0xb2   : > { %420 = vperm.xlu1 %730, %v403_v30   ;;  %427 = vperm.xlu2 %731, %v402_v29  }
  0xb7   : > { %v375_v10 = vpop.permute.xlu0 %374 }
  0xb8   : > { %v378_v15 = vsub.f32 %v375_v10, %v377_v8 }
  0xba   : > { %733 = vset.pattern.permute.xlu1 %v867_v21  ;;  %732 = vset.pattern.permute.xlu2 %v867_v21  ;;  %v379_v21 = vand.u32 2147483647, %v378_v15 }
  0xbb   : > { %441 = vperm.xlu1 %733, %v402_v29   ;;  %435 = vperm.xlu2 %732, %v403_v30  }
  0xc3   : > { %734 = vset.pattern.permute.xlu2 %v866_v20 }
  0xc4   : > { %367 = vperm.xlu2 %734, %v989_v1  }
  0xcc   : > { %736 = vset.pattern.permute.xlu2 %v865_v18 }
  0xcd   : > { %382 = vperm.xlu2 %736, %v989_v1  }
  0xd5   : > { %737 = vset.pattern.permute.xlu2 %v868_v31 }
  0xd6   : > { %390 = vperm.xlu2 %737, %v989_v1  }
  0xe5   : > { %347 = vadd.xlane.f32.xlu1 %v740_v27 }
  0xf9   : > { %v452_v32 = vpop.permute.xlu2 %451 }
  0xfa   : > { %v455_v58 = vadd.f32 %v454_v54, %v452_v32 }
 0x10c   : > { %v428_v36 = vpop.permute.xlu2 %427 }
 0x10d   : > { %v431_v51 = vmax.f32 %v428_v36, %v430_v46  ;;  %v473_v62 = vmin.f32 %v428_v36, %v430_v46 }
 0x115   : > { %v436_v44 = vpop.permute.xlu2 %435 }
 0x116   : > { %v439_v48 = vmin.f32 %v436_v44, %v438_v42  ;;  %v475_v59 = vmax.f32 %v436_v44, %v438_v42 }
 0x11e   : > { %v368_v3 = vpop.permute.xlu2 %367 }
 0x11f   : > { %v371_v13 = vsub.f32 %v368_v3, %v370_v7 }
 0x121   : > { %v372_v19 = vand.u32 2147483647, %v371_v13 }
 0x123   : > { %v380_v27 = vadd.f32 %v379_v21, %v372_v19 }
 0x124   : > { %v421_v35 = vpop.permute.xlu1 %420 }
 0x125   : > { %v424_v49 = vmin.f32 %v421_v35, %v423_v43  ;;  %v472_v60 = vmax.f32 %v421_v35, %v423_v43 }
 0x127   : > { %v432_v53 = vsub.f32 %v424_v49, %v431_v51  ;;  %v474_v0 = vsub.f32 %v472_v60, %v473_v62  ;;  %v383_v11 = vpop.permute.xlu2 %382 }
 0x128   : > { %v386_v20 = vsub.f32 %v383_v11, %v385_v14 }
 0x129   : > { %v433_v56 = vmax.f32 %v432_v53, 0.0 }
 0x12a   : > { %v387_v26 = vand.u32 2147483647, %v386_v20 }
 0x12c   : > { %v388_v39 = vadd.f32 %v387_v26, %v380_v27 }
 0x12d   : > { %v442_v41 = vpop.permute.xlu1 %441 }
 0x12e   : > { %v445_v47 = vmax.f32 %v442_v41, %v444_v40  ;;  %v476_v57 = vmin.f32 %v442_v41, %v444_v40 }
 0x130   : > { %v446_v52 = vsub.f32 %v439_v48, %v445_v47  ;;  %v477_v63 = vsub.f32 %v475_v59, %v476_v57  ;;  %v391_v28 = vpop.permute.xlu2 %390 }
 0x131   : > { %v394_v33 = vsub.f32 %v391_v28, %v393_v24 }
 0x132   : > { %v447_v55 = vmax.f32 %v446_v52, 0.0  ;;  %v1032_v2 = vmul.f32 %v477_v63, %v474_v0 }
 0x133   : > { %v395_v44 = vand.u32 2147483647, %v394_v33 }
 0x134   : > { %v1027_v61 = vmul.f32 %v447_v55, %v433_v56  ;;  %v489_v32 = vand.u32 2147483647, %v1032_v2  ;;  %v491_v34 = vand.u32 2147483648, %v1032_v2  ;;  %vm485_vm4 = vweird.f32 %v1032_v2  ;;  %v344_v55 = vpop.f32.mrf.mxu0 }
 0x135   : > { %v396_v53 = vadd.f32 %v395_v44, %v388_v39 }
 0x136   : > { %v1030_v1 = vsub.f32 %v455_v58, %v1027_v61  ;;  %vm490_vm7 = vcmp.eq.f32.partialorder %v489_v32, 8.507059e+37  ;;  %v492_v42 = vor.u32 1.1754944e-38, %v491_v34 }
 0x137   : > { %v496_v59 = vmul.f32 5.0, %v396_v53 }
 0x138   : > { %741 = vrcp.f32 %v1030_v1  ;;  %v468_v25 = vand.u32 2147483648, %v1030_v1  ;;  %vm462_vm1 = vweird.f32 %v1030_v1  ;;  %v466_v29 = vand.u32 2147483647, %v1030_v1 }
 0x139   : > { %743 = vrcp.f32 %v1032_v2  ;;  %v479_v49 = vsub.f32 %v1032_v2, %v1030_v1 }
 0x13a   : > { %v469_v37 = vor.u32 1.1754944e-38, %v468_v25  ;;  %vm467_vm6 = vcmp.eq.f32.partialorder %v466_v29, 8.507059e+37 }
 0x13e   : > { %v742_v4 = vpop.eup %741 }
 0x13f   : > { %v744_v5 = vpop.eup %743  ;;  %v458_v6 = vmul.f32 %v742_v4, %v1030_v1  ;;  %vm463_vm0 = vweird.f32 %v742_v4 }
 0x140   : > { %v481_v9 = vmul.f32 %v744_v5, %v1032_v2  ;;  %vm486_vm2 = vweird.f32 %v744_v5  ;;  %vm464_vm3 = vmor %vm462_vm1, %vm463_vm0 }
 0x141   : > { %v459_v12 = vsub.f32 1.0, %v458_v6  ;;  %vm487_vm5 = vmor %vm485_vm4, %vm486_vm2 }
 0x142   : > { %v482_v16 = vsub.f32 1.0, %v481_v9 }
 0x143   : > { %v460_v17 = vmul.f32 %v742_v4, %v459_v12 }
 0x144   : > { %v483_v22 = vmul.f32 %v744_v5, %v482_v16 }
 0x145   : > { %v461_v23 = vadd.f32 %v742_v4, %v460_v17 }
 0x146   : > { %v484_v30 = vadd.f32 %v744_v5, %v483_v22 }
 0x147   : > { %v465_v35 = vsel %vm464_vm3, %v742_v4, %v461_v23 }
 0x148   : > { %v488_v38 = vsel %vm487_vm5, %v744_v5, %v484_v30  ;;  %v470_v41 = vsel %vm467_vm6, %v469_v37, %v465_v35 }
 0x149   : > { %v493_v47 = vsel %vm490_vm7, %v492_v42, %v488_v38  ;;  %v471_v48 = vmul.f32 %v470_v41, %v1027_v61 }
 0x14a   : > { %v494_v52 = vmul.f32 %v493_v47, %v479_v49 }
 0x14c   : > { %v495_v57 = vsub.f32 %v471_v48, %v494_v52 }
 0x14e   : > { %v500_v61 = vmul.f32 -2.0, %v495_v57 }
 0x158   : > { %v348_v18 = vpop.xlane.xlu1 %347 }
 0x159   : > { %745 = vrcp.f32 %v348_v18  ;;  %v360_v43 = vand.u32 2147483648, %v348_v18  ;;  %v358_v46 = vand.u32 2147483647, %v348_v18  ;;  %vm354_vm9 = vweird.f32 %v348_v18 }
 0x15b   : > { %v361_v51 = vor.u32 1.1754944e-38, %v360_v43  ;;  %vm359_vm11 = vcmp.eq.f32.partialorder %v358_v46, 8.507059e+37 }
 0x15f   : > { %v746_v31 = vpop.eup %745 }
 0x160   : > { %v350_v36 = vmul.f32 %v746_v31, %v348_v18  ;;  %vm355_vm8 = vweird.f32 %v746_v31 }
 0x161   : > { %vm356_vm10 = vmor %vm354_vm9, %vm355_vm8 }
 0x162   : > { %v351_v40 = vsub.f32 1.0, %v350_v36 }
 0x164   : > { %v352_v45 = vmul.f32 %v746_v31, %v351_v40 }
 0x166   : > { %v353_v50 = vadd.f32 %v746_v31, %v352_v45 }
 0x168   : > { %v357_v54 = vsel %vm356_vm10, %v746_v31, %v353_v50 }
 0x169   : > { %v362_v56 = vsel %vm359_vm11, %v361_v51, %v357_v54 }
 0x16a   : > { %v497_v58 = vmul.f32 %v362_v56, %v344_v55 }
 0x16c   : > { %v498_v60 = vmul.f32 -1.0, %v497_v58 }
 0x16e   : > { %v499_v62 = vadd.f32 %v498_v60, %v496_v59 }
 0x170   : > { %v501_v63 = vadd.f32 %v500_v61, %v499_v62 }
 0x172   : > { %502 = vst [vmem:[%s286_s10] sm:$0xff] %v501_v63 }
 0x173   : > { %804 = shalt.err (!%p801_p0)
}
 0x174   : > { %661 = dma.vmem_to_hbm [thread:$0]  (%p945_p9), %s518_s11, 128, %s520_s12, %s504_s18  }
 0x175 PF: > { %s531_s24 = sand.u32 1, %s839_s15   ;;  %p668_p1 = pnand %p644_p12, %p952_p11 }
 0x176   : > { %s532_s7 = scalar_lea.sflag [#allocation4], %s531_s24 }
 0x177   : > { %p669_p2 = pneg %p668_p1 }
 0x179   : > { %834 = dma.done.wait (%p669_p2), %s532_s7, 128  }
 0x17a   : > { %836 = vsyncadd (%p669_p2), %s532_s7, 4294967168  ;;  %s20_s20 = sadd.s32 1, %s859_s20   ;;  %s1099_s15 = smov %s843_s16 }
 0x17b   : > { %p17_p3 = scmp.ge.s32.totalorder %s20_s20, 4   ;;  %s1100_s16 = smov %s847_s17 }
 0x17c   : > { %s1101_s17 = smov %s950_s29  ;;  %s1102_s18 = smov %s855_s19 }
 0x17d   : > { %s1103_s19 = smov %s1105_s23  ;;  %19 = sbr.rel (!%p17_p3) target bundleno = 6 (0x6), region = 90 }
 0x182   :  { %538 = vsyncpa [#allocation3], 1 }
 0x183   :  { %540 = vsyncpa [#allocation3 + $0x1], 1 }
 0x184   :  { %541 = vsyncpa [#allocation4], 1 }
 0x185   :  { %543 = vsyncpa [#allocation4 + $0x1], 1 }

</bundles_post_ra>
